<compile_context>
chip_gen: v7x
topology: tpu7x:2x2x1
jax: 0.10.0
libtpu: 0.0.40
codegen_flags: <defaults>
</compile_context>

<pallas_src>
import jax
import jax.numpy as jnp
from jax.experimental import pallas as pl
from jax.experimental.pallas import tpu as pltpu


def _round_up(x, m):
    return -(-x // m) * m


# --------------------------------------------------------------------------- #
# Kernel
# --------------------------------------------------------------------------- #
def spatial_gcn_kernel(x_ref, w_ref, a_ref, sh_ref, o_ref):
    """One (sample, time-tile) grid step.

    x_ref : (1, C_in, Vp, TB)        input; vertices on sublanes, time on lanes
    w_ref : (2*C_out, C_in)          fused [gcn ; BN-folded residual] 1x1 weights
    a_ref : (C_out//G, G*Vp, G*Vp)   BN-scaled, transposed, block-diagonal adjacency
    sh_ref: (C_out, Vp, 1)           fused per-(channel, vertex) shift (f32)
    o_ref : (1, C_out, Vp, TB)       output (transposed back in the wrapper)
    """
    x = x_ref[0]                                     # (C_in, Vp, TB)
    w = w_ref[...]                                   # (2*C_out, C_in)
    a_blk = a_ref[...]                               # (n_grp, G*Vp, G*Vp)
    c_out = w.shape[0] // 2
    n_grp, gvp, _ = a_blk.shape
    vp, tb = x.shape[1], x.shape[2]

    # Both 1x1 convs (gcn + BN-folded residual) in one MXU contraction over
    # C_in; the result's lane dim stays TB (lane-dense for realistic T).
    yr = jnp.einsum('oc,cvt->ovt', w, x, preferred_element_type=jnp.float32)
    y = yr[:c_out].astype(a_blk.dtype)               # gcn branch, back to MXU dtype
    r = yr[c_out:]                                   # residual branch (f32 epilogue)

    # Channel-packed graph conv: each batched matmul covers G channels via the
    # block-diagonal adjacency instead of C_out tiny (V x V) MXU passes.
    #   z[c, w, t] = sum_v aT[c, w, v] * y[c, v, t]
    y_p = y.reshape(n_grp, gvp, tb)
    z = jnp.einsum('gpq,gqt->gpt', a_blk, y_p,
                   preferred_element_type=jnp.float32).reshape(c_out, vp, tb)

    # DropBlocks are identity in eval / keep_prob == 1; shift is a free
    # lane-broadcast add; activation: ReLU.
    o_ref[0] = jnp.maximum(z + r + sh_ref[...], 0.0).astype(o_ref.dtype)


# --------------------------------------------------------------------------- #
# VMEM budgeting
# --------------------------------------------------------------------------- #
def _vmem_bytes(c_in, c_out, vp, tb, n_grp, gvp, in_b, out_b):
    su = lambda d: _round_up(max(int(d), 1), 8)      # sublane padding
    la = lambda d: _round_up(max(int(d), 1), 128)    # lane padding
    x_blk = c_in * su(vp) * la(tb) * in_b
    o_blk = c_out * su(vp) * la(tb) * out_b
    w_blk = su(2 * c_out) * la(c_in) * in_b
    a_blk = n_grp * su(gvp) * la(gvp) * in_b
    sh_blk = c_out * su(vp) * la(1) * 4
    # in-kernel temporaries (f32 accumulators + casts), single sample
    tmp = (2 * c_out * 4 + c_out * (in_b + 4 + out_b)) * su(vp) * la(tb)
    # every BlockSpec'd operand is double-buffered by the pipeline
    return 2 * (x_blk + o_blk + w_blk + a_blk + sh_blk) + tmp


# --------------------------------------------------------------------------- #
# Wrapper
# --------------------------------------------------------------------------- #
def spatial_graph_conv(x, wg, bg, A, edge,
                       gamma, beta, mean, var,
                       wr, br, gamma_r, beta_r, mean_r, var_r,
                       eps=1e-5,
                       compute_dtype=jnp.bfloat16,   # MXU / HBM-input dtype
                       out_dtype=None,               # default: x.dtype
                       mxu_tile=256,                 # use 128 on v5e
                       tb_cap=512,
                       vmem_budget_bytes=28 * 1024 * 1024):
    """Eval-mode SpatialGraphConv forward: (N, C_in, T, V) -> (N, C_out, T, V).

    Residual branch = Conv1x1 + BN (the module's in_channel != out_channel path).
    """
    n, c_in, t, v = x.shape
    c_out = wg.shape[0]
    out_dtype = x.dtype if out_dtype is None else out_dtype
    f32 = jnp.float32

    # ---- host-side folding (all in f32; cast to compute_dtype last) ----
    scale = (gamma / jnp.sqrt(var + eps)).astype(f32)
    shift = (beta - mean * scale).astype(f32)
    scale_r = (gamma_r / jnp.sqrt(var_r + eps)).astype(f32)
    shift_r = (beta_r - mean_r * scale_r).astype(f32)

    vp = _round_up(v, 8)                             # sublane-aligned vertex count
    a_e = (A * edge).astype(f32)                     # (C_out, V, V)  [c, v, w]
    if vp != v:
        a_e = jnp.pad(a_e, ((0, 0), (0, vp - v), (0, vp - v)))

    # gcn bias passes through the graph conv -> per-(c, w) term; add BN shift
    # and the BN-folded residual bias: a single fused shift map.
    shift_all = (shift[:, None]
                 + scale[:, None] * bg[:, None] * jnp.sum(a_e, axis=1)
                 + (scale_r * br + shift_r)[:, None])             # (C_out, Vp)
    shift_all = shift_all[:, :, None].astype(f32)                 # (C_out, Vp, 1)

    # BN scale folded into the adjacency; transposed so the kernel contracts v.
    a_t = jnp.transpose(scale[:, None, None] * a_e, (0, 2, 1))    # (C_out, Vp(w), Vp(v))

    # Pack G channels per block-diagonal matmul (G*Vp sized to the MXU tile).
    g = 1
    for d in range(c_out, 0, -1):
        if c_out % d == 0 and d * vp <= max(mxu_tile, vp):
            g = d
            break
    n_grp = c_out // g
    gvp = g * vp
    eye_g = jnp.eye(g, dtype=f32)
    a_blk = jnp.einsum('gjwv,jk->gjwkv', a_t.reshape(n_grp, g, vp, vp), eye_g)
    a_blk = a_blk.reshape(n_grp, gvp, gvp).astype(compute_dtype)

    # Fused weights: rows [0:C_out] = gcn conv, rows [C_out:] = BN-folded residual.
    w_comb = jnp.concatenate([wg, scale_r[:, None] * wr],
                             axis=0).astype(compute_dtype)        # (2*C_out, C_in)

    # ---- time padding + layout plumbing (T on lanes) ----
    if t % 128 == 0 or t < 128:
        t_pad = t                                    # short T: one full-extent tile
    else:
        t_pad = _round_up(t, 128)                    # long T: keep tb tunable
    x_p = x
    if t_pad != t or vp != v:
        x_p = jnp.pad(x, ((0, 0), (0, 0), (0, t_pad - t), (0, vp - v)))
    # TODO(synk): keep activations in (N, C, V, T) across stacked layers and
    # drop this transpose pair (halves HBM traffic on this HBM-bound kernel).
    x_vt = jnp.transpose(x_p, (0, 1, 3, 2)).astype(compute_dtype)   # (N, C_in, Vp, Tp)

    in_b = jnp.dtype(compute_dtype).itemsize
    out_b = jnp.dtype(out_dtype).itemsize

    # ---- tb from an explicit VMEM budget; keep >= 2 parallel grid blocks ----
    est = lambda tb: _vmem_bytes(c_in, c_out, vp, tb, n_grp, gvp, in_b, out_b)
    if t_pad % 128 != 0:
        tb = t_pad
    else:
        cands = [m for m in range(128, min(t_pad, tb_cap) + 1, 128)
                 if t_pad % m == 0]
        tb = cands[0]
        for m in reversed(cands):
            if est(m) <= vmem_budget_bytes:
                tb = m
                break
        if n * (t_pad // tb) < 2:                    # feed both v7x TensorCores
            smaller = [m for m in cands if m < t_pad]
            if smaller:
                tb = smaller[-1]
    vmem_limit = int(min(max(2 * est(tb), 32 * 1024 * 1024), 64 * 1024 * 1024))

    grid = (n, t_pad // tb)
    out_vt = pl.pallas_call(
        spatial_gcn_kernel,
        out_shape=jax.ShapeDtypeStruct((n, c_out, vp, t_pad), out_dtype),
        grid=grid,
        in_specs=[
            pl.BlockSpec((1, c_in, vp, tb), lambda b, s: (b, 0, 0, s)),     # x
            pl.BlockSpec((2 * c_out, c_in), lambda b, s: (0, 0)),           # fused W
            pl.BlockSpec((n_grp, gvp, gvp), lambda b, s: (0, 0, 0)),        # packed A^T
            pl.BlockSpec((c_out, vp, 1), lambda b, s: (0, 0, 0)),           # fused shift
        ],
        out_specs=pl.BlockSpec((1, c_out, vp, tb), lambda b, s: (b, 0, 0, s)),
        compiler_params=pltpu.CompilerParams(
            dimension_semantics=("parallel", "parallel"),
            vmem_limit_bytes=vmem_limit),
    )(x_vt, w_comb, a_blk, shift_all)

    out = jnp.transpose(out_vt, (0, 1, 3, 2))        # (N, C_out, Tp, Vp)
    if t_pad != t or vp != v:
        out = out[:, :, :t, :v]
    return out


# --------------------------------------------------------------------------- #
# Pure-JAX reference (eval-mode module semantics)
# --------------------------------------------------------------------------- #
def reference(x, wg, bg, A, edge, gamma, beta, mean, var,
              wr, br, gamma_r, beta_r, mean_r, var_r, eps=1e-5):
    def bn(y, g, b, m, vv):
        return ((y - m[None, :, None, None])
                / jnp.sqrt(vv[None, :, None, None] + eps)
                * g[None, :, None, None] + b[None, :, None, None])

    y = jnp.einsum('oc,nctv->notv', wg, x) + bg[None, :, None, None]
    y = jnp.einsum('nctv,cvw->nctw', y, A * edge)
    y = bn(y, gamma, beta, mean, var)
    r = jnp.einsum('oc,nctv->notv', wr, x) + br[None, :, None, None]
    r = bn(r, gamma_r, beta_r, mean_r, var_r)
    return jnp.maximum(y + r, 0.0)


if __name__ == "__main__":
    N, C_IN, C_OUT, T, V = 2, 4, 8, 16, 16
    EPS = 1e-5

    key = jax.random.PRNGKey(0)
    ks = jax.random.split(key, 16)

    x = jax.random.normal(ks[0], (N, C_IN, T, V), jnp.float32)

    # gcn = Conv2d(C_in, C_out, 1, bias=True)
    wg = 0.2 * jax.random.normal(ks[1], (C_OUT, C_IN), jnp.float32)
    bg = 0.1 * jax.random.normal(ks[2], (C_OUT,), jnp.float32)

    # A parameter (row-normalized adjacency); edge = ones_like(A)
    A = jax.random.uniform(ks[3], (C_OUT, V, V), jnp.float32)
    A = A / jnp.sum(A, axis=-1, keepdims=True)
    edge = jnp.ones_like(A)

    # residual = Sequential(Conv2d(C_in, C_out, 1, bias=True), BatchNorm2d(C_out))
    wr = 0.2 * jax.random.normal(ks[4], (C_OUT, C_IN), jnp.float32)
    br = 0.1 * jax.random.normal(ks[5], (C_OUT,), jnp.float32)

    # BatchNorm2d (eval) raw params, main branch.
    gamma = 1.0 + 0.1 * jax.random.normal(ks[6], (C_OUT,), jnp.float32)
    beta = 0.1 * jax.random.normal(ks[7], (C_OUT,), jnp.float32)
    mean = 0.1 * jax.random.normal(ks[8], (C_OUT,), jnp.float32)
    var = jax.random.uniform(ks[9], (C_OUT,), jnp.float32, minval=0.5, maxval=1.5)

    # BatchNorm2d (eval) raw params, residual branch.
    gamma_r = 1.0 + 0.1 * jax.random.normal(ks[10], (C_OUT,), jnp.float32)
    beta_r = 0.1 * jax.random.normal(ks[11], (C_OUT,), jnp.float32)
    mean_r = 0.1 * jax.random.normal(ks[12], (C_OUT,), jnp.float32)
    var_r = jax.random.uniform(ks[13], (C_OUT,), jnp.float32, minval=0.5, maxval=1.5)

    args = (x, wg, bg, A, edge, gamma, beta, mean, var,
            wr, br, gamma_r, beta_r, mean_r, var_r)

    ref = reference(*args, eps=EPS)

    # Default (recommended v6e/v7x) path: bf16 MXU inputs + bf16 output.
    out_bf16 = spatial_graph_conv(*args, eps=EPS,
                                  compute_dtype=jnp.bfloat16,
                                  out_dtype=jnp.bfloat16)
    out_bf16 = jax.block_until_ready(out_bf16)
    assert out_bf16.shape == (N, C_OUT, T, V)
    assert jnp.allclose(out_bf16.astype(jnp.float32), ref,
                        atol=5e-2, rtol=5e-2), "bf16 kernel mismatch vs reference"

    # Full-precision path: tight check against the f32 reference.
    out_f32 = spatial_graph_conv(*args, eps=EPS, compute_dtype=jnp.float32)
    out_f32 = jax.block_until_ready(out_f32)
    assert out_f32.shape == (N, C_OUT, T, V)
    assert jnp.allclose(out_f32, ref,
                        atol=2e-4, rtol=2e-4), "f32 kernel mismatch vs reference"

    print("KERNEL_OK")
</pallas_src>

<mosaic_0001>
module attributes {stable_mosaic.version = 11 : i64} {
  func.func @spatial_gcn_kernel(%arg0: i32, %arg1: i32, %arg2: memref<1x4x16x16xbf16, #tpu.memory_space<vmem>>, %arg3: memref<16x4xbf16, #tpu.memory_space<vmem>>, %arg4: memref<1x128x128xbf16, #tpu.memory_space<vmem>>, %arg5: memref<8x16x1xf32, #tpu.memory_space<vmem>>, %arg6: memref<1x8x16x16xbf16, #tpu.memory_space<vmem>>) attributes {dimension_semantics = [#tpu.dimension_semantics<parallel>, #tpu.dimension_semantics<parallel>], iteration_bounds = array<i64: 2, 1>, scalar_prefetch = 0 : i64, scratch_operands = 0 : i64, tpu.core_type = #tpu.core_type<tc>, window_params = [{transform_indices = @transform_0, window_bounds = array<i64: 1, 4, 16, 16>}, {pipeline_mode = #tpu.pipeline_mode<synchronous>, transform_indices = @transform_1, window_bounds = array<i64: 16, 4>}, {pipeline_mode = #tpu.pipeline_mode<synchronous>, transform_indices = @transform_2, window_bounds = array<i64: 1, 128, 128>}, {pipeline_mode = #tpu.pipeline_mode<synchronous>, transform_indices = @transform_3, window_bounds = array<i64: 8, 16, 1>}, {transform_indices = @transform_4, window_bounds = array<i64: 1, 8, 16, 16>}]} {
    %c0 = arith.constant 0 : index
    %c0_0 = arith.constant 0 : index
    %c0_1 = arith.constant 0 : index
    %c0_2 = arith.constant 0 : index
    %0 = vector.load %arg2[%c0, %c0_0, %c0_1, %c0_2] : memref<1x4x16x16xbf16, #tpu.memory_space<vmem>>, vector<1x4x16x16xbf16>
    %1 = vector.shape_cast %0 : vector<1x4x16x16xbf16> to vector<4x16x16xbf16>
    %c0_3 = arith.constant 0 : index
    %c0_4 = arith.constant 0 : index
    %2 = vector.load %arg3[%c0_3, %c0_4] : memref<16x4xbf16, #tpu.memory_space<vmem>>, vector<16x4xbf16>
    %c0_5 = arith.constant 0 : index
    %c0_6 = arith.constant 0 : index
    %c0_7 = arith.constant 0 : index
    %3 = vector.load %arg4[%c0_5, %c0_6, %c0_7] : memref<1x128x128xbf16, #tpu.memory_space<vmem>>, vector<1x128x128xbf16>
    "tpu.trace_start"() <{level = 10 : i32, message = "oc,cvt->ovt"}> : () -> ()
    %cst = arith.constant dense<0.000000e+00> : vector<16x16x16xf32>
    %4 = tpu.matmul %2, %1, %cst {dimension_numbers = #tpu.dot_dimension_numbers<[1], [0], [0], [1, 2], [0, 0, 1, 1, 1, 2], [], []>} : vector<16x4xbf16>, vector<4x16x16xbf16>, vector<16x16x16xf32> -> vector<16x16x16xf32>
    "tpu.trace_stop"() : () -> ()
    %5 = vector.extract_strided_slice %4 {offsets = [0, 0, 0], sizes = [8, 16, 16], strides = [1, 1, 1]} : vector<16x16x16xf32> to vector<8x16x16xf32>
    %6 = arith.truncf %5 : vector<8x16x16xf32> to vector<8x16x16xbf16>
    %7 = vector.extract_strided_slice %4 {offsets = [8, 0, 0], sizes = [8, 16, 16], strides = [1, 1, 1]} : vector<16x16x16xf32> to vector<8x16x16xf32>
    %8 = vector.shape_cast %6 : vector<8x16x16xbf16> to vector<1x128x16xbf16>
    "tpu.trace_start"() <{level = 10 : i32, message = "gpq,gqt->gpt"}> : () -> ()
    %cst_8 = arith.constant dense<0.000000e+00> : vector<1x128x16xf32>
    %9 = tpu.matmul %3, %8, %cst_8 {dimension_numbers = #tpu.dot_dimension_numbers<[2], [1], [1], [2], [0, 0, 0, 1, 1, 2], [0], [0]>} : vector<1x128x128xbf16>, vector<1x128x16xbf16>, vector<1x128x16xf32> -> vector<1x128x16xf32>
    "tpu.trace_stop"() : () -> ()
    %10 = vector.shape_cast %9 : vector<1x128x16xf32> to vector<8x16x16xf32>
    %11 = arith.addf %10, %7 : vector<8x16x16xf32>
    %c0_9 = arith.constant 0 : index
    %c0_10 = arith.constant 0 : index
    %c0_11 = arith.constant 0 : index
    %12 = vector.load %arg5[%c0_9, %c0_10, %c0_11] : memref<8x16x1xf32, #tpu.memory_space<vmem>>, vector<8x16x1xf32>
    %13 = vector.broadcast %12 : vector<8x16x1xf32> to vector<8x16x16xf32>
    %14 = arith.addf %11, %13 : vector<8x16x16xf32>
    %cst_12 = arith.constant 0.000000e+00 : f32
    %15 = vector.broadcast %cst_12 : f32 to vector<8x16x16xf32>
    %16 = arith.maximumf %14, %15 : vector<8x16x16xf32>
    %17 = arith.truncf %16 : vector<8x16x16xf32> to vector<8x16x16xbf16>
    %c0_13 = arith.constant 0 : index
    %c0_14 = arith.constant 0 : index
    %c0_15 = arith.constant 0 : index
    %c0_16 = arith.constant 0 : index
    %18 = vector.load %arg6[%c0_13, %c0_14, %c0_15, %c0_16] : memref<1x8x16x16xbf16, #tpu.memory_space<vmem>>, vector<1x8x16x16xbf16>
    %19 = vector.shape_cast %18 : vector<1x8x16x16xbf16> to vector<8x16x16xbf16>
    %20 = vector.shape_cast %17 : vector<8x16x16xbf16> to vector<1x8x16x16xbf16>
    tpu.vector_store %arg6[%c0_13, %c0_14, %c0_15, %c0_16], %20 {strides = array<i32>} : memref<1x8x16x16xbf16, #tpu.memory_space<vmem>>, vector<1x8x16x16xbf16>,
    return
  }
  func.func @transform_0(%arg0: i32, %arg1: i32) -> (i32, i32, i32, i32) {
    %c0_i32 = arith.constant 0 : i32
    %c0_i32_0 = arith.constant 0 : i32
    %c0_i32_1 = arith.constant 0 : i32
    return %arg0, %c0_i32, %c0_i32_0, %arg1 : i32, i32, i32, i32
  }
  func.func @transform_1(%arg0: i32, %arg1: i32) -> (i32, i32) {
    %c0_i32 = arith.constant 0 : i32
    %c0_i32_0 = arith.constant 0 : i32
    %c0_i32_1 = arith.constant 0 : i32
    return %c0_i32, %c0_i32_0 : i32, i32
  }
  func.func @transform_2(%arg0: i32, %arg1: i32) -> (i32, i32, i32) {
    %c0_i32 = arith.constant 0 : i32
    %c0_i32_0 = arith.constant 0 : i32
    %c0_i32_1 = arith.constant 0 : i32
    %c0_i32_2 = arith.constant 0 : i32
    return %c0_i32, %c0_i32_0, %c0_i32_1 : i32, i32, i32
  }
  func.func @transform_3(%arg0: i32, %arg1: i32) -> (i32, i32, i32) {
    %c0_i32 = arith.constant 0 : i32
    %c0_i32_0 = arith.constant 0 : i32
    %c0_i32_1 = arith.constant 0 : i32
    %c0_i32_2 = arith.constant 0 : i32
    return %c0_i32, %c0_i32_0, %c0_i32_1 : i32, i32, i32
  }
  func.func @transform_4(%arg0: i32, %arg1: i32) -> (i32, i32, i32, i32) {
    %c0_i32 = arith.constant 0 : i32
    %c0_i32_0 = arith.constant 0 : i32
    %c0_i32_1 = arith.constant 0 : i32
    return %arg0, %c0_i32, %c0_i32_0, %arg1 : i32, i32, i32, i32
  }
}

</mosaic_0001>

<bundles_post_ra>
// kernel: tpu_custom_call.1
= control target key start
LH: loop header
LB: loop body
LE: loop exit
PB: predicated region body
PF: predicated region fallthrough
CT: control target
= control target key end

     0   :  { %9 = vsyncpa [#allocation3], 0  ;;  %s2662_s0 = inlined_call_operand.vmem [shape: bf16[2,4,16,16], index: 0, kind: input, shape index: {}]   ;;  %s2663_s1 = inlined_call_operand.vmem [shape: bf16[16,4], index: 1, kind: input, shape index: {}]   ;;  %s2664_s2 = inlined_call_operand.vmem [shape: bf16[1,128,128], index: 2, kind: input, shape index: {}]   ;;  %s2665_s3 = inlined_call_operand.vmem [shape: f32[8,16,1], index: 3, kind: input, shape index: {}]   ;;  %s2666_s4 = inlined_call_operand.hbm [shape: bf16[2,8,16,16], index: 4, kind: output, shape index: {}]  }
   0x1   :  { %11 = vsyncpa [#allocation3 + $0x1], 0  ;;  %s2106_s15 = smov 0   ;;  %s2108_s16 = smov 0  }
   0x2   :  { %s2110_s17 = smov 0   ;;  %s2112_s18 = smov 0  }
   0x3   :  { %s2114_s19 = smov 0   ;;  %s2116_s20 = smov 0  }
   0x4 LB: > { %s1766_s21 = sadd.s32 4294967295, %s2066_s20   ;;  %s1767_s22 = sadd.s32 4294967294, %s2066_s20   ;;  %s2066_s20 = sphi %s2116_s20, %s17_s20   ;;  %s2062_s19 = sphi %s2114_s19, %s2676_s19   ;;  %s2058_s18 = sphi %s2112_s18, %s2675_s18   ;;  %s2054_s17 = sphi %s2110_s17, %s2674_s17   ;;  %s2050_s16 = sphi %s2108_s16, %s2673_s16   ;;  %s2046_s15 = sphi %s2106_s15, %s2672_s15  }
   0x5   : > { %s29_s23 = sadd.s32 1, %s2062_s19  ;;  %s129_s24 = sadd.s32 1, %s2054_s17 }
   0x6   : > { %p31_p0 = scmp.ge.s32.totalorder %s29_s23, 2  ;;  %p139_p1 = scmp.ne.s32.totalorder %s2054_s17, %s2050_s16 }
   0x7   : > { %p140_p2 = scmp.eq.s32.totalorder %s1766_s21, 1  ;;  %p145_p3 = scmp.ne.s32.totalorder %s2050_s16, %s2046_s15 }
   0x8   : > { %s2678_s23 = smov (%p31_p0, %s29_s23), 0  ;;  %p146_p5 = scmp.eq.s32.totalorder %s1767_s22, 1 }
   0x9   : > { %p2146_p4 = por %p140_p2, %p139_p1  ;;  %s124_s26 = ssub.s32 %s2062_s19, %s2678_s23 }
   0xa   : > { %p1770_p6 = scmp.ge.s32.totalorder %s2066_s20, 1  ;;  %p127_p7 = scmp.eq.s32.totalorder %s124_s26, 0 }
   0xb   : > { %p2153_p8 = por %p146_p5, %p145_p3  ;;  %p184_p9 = scmp.lt.s32.totalorder %s2066_s20, 3 }
   0xc   : > { %s2159_s28 = scalar_select %p127_p7, %s2054_s17, %s129_s24  }
   0xd   : > { %p185_p10 = pnand %p1770_p6, %p184_p9 }
   0xe   : > { %p213_p11 = scmp.lt.s32.totalorder (!%p185_p10), %s2058_s18, 1  ;;  %v276_v0 = vlaneseq (!%p185_p10)  ;;  %v2068_v1 = vmov (!%p185_p10), 1983009808   ;;  %v2069_v3 = vmov (!%p185_p10), 1934713408   ;;  %s2070_s8 = smov (!%p185_p10), 64  }
   0xf   : > { %188 = sbr.rel (%p185_p10) target bundleno = 833 (0x341), region = 36  ;;  %v274_v2 = vunpack.c.l.s4 (!%p185_p10), %v2068_v1  ;;  %v291_v4 = vunpack.c.l.s4 (!%p185_p10), %v2069_v3  ;;  %s2071_s9 = smov (!%p185_p10), 32   ;;  %vm478_vm0 = vcmask (!%p185_p10), 130048   ;;  %vm482_vm1 = vcmask (!%p185_p10), 261120  }
  0x10   : > { %v277_v5 = vshrl.u32 (!%p185_p10), %v276_v0, 7  ;;  %s2667_s10 = smov (!%p185_p10), 16   ;;  %s2073_s11 = smov (!%p185_p10), 48   ;;  %vm485_vm2 = vcmask (!%p185_p10), 392192   ;;  %vm488_vm3 = vcmask (!%p185_p10), 523264   ;;  %vm491_vm4 = vcmask (!%p185_p10), 654336  }
  0x11   : > { %v275_v6 = vunpack.c.0.s8 (!%p185_p10), %v274_v2  ;;  %v292_v7 = vunpack.c.0.s8 (!%p185_p10), %v291_v4  ;;  %v2074_v4 = vmov (!%p185_p10), 0   ;;  %s2075_s12 = smov (!%p185_p10), 80   ;;  %s2077_s13 = smov (!%p185_p10), 96   ;;  %vm494_vm5 = vcmask (!%p185_p10), 785408  }
  0x12   : > { %652 = vmatprep.mubr.bf16.mxu0 (!%p185_p10), %v2074_v4  ;;  %1978 = vset.pattern.permute.xlu0 (!%p185_p10), %v2074_v4  ;;  %s2078_s14 = smov (!%p185_p10), 112   ;;  %vm497_vm6 = vcmask (!%p185_p10), 916480   ;;  %vm615_vm7 = vcmask (!%p185_p10), 1041408   ;;  %vm611_vm8 = vcmask (!%p185_p10), 31744   ;;  %s210_s26 = sand.u32 (!%p185_p10), 1, %s2050_s16   ;;  %vm1656_vm9 = vcmask (!%p185_p10), 125952  }
  0x13   : > { %v2166_v8 = vsub.s32 (!%p185_p10), %v275_v6, %v277_v5  ;;  %v2168_v19 = vsub.s32 (!%p185_p10), %v292_v7, %v277_v5  ;;  %1977 = vset.pattern.permute.xlu1 (!%p185_p10), %v2074_v4  ;;  %v2076_v7 = vmov (!%p185_p10), 0.0  }
  0x16   : > { %s214_s29 = scalar_select %p213_p11, %s2058_s18, 1 }
  0x18   : > { %s1820_s30 = sshll.u32 %s214_s29, 5 }
  0x19   : > { %s220_s7 = scalar_lea.vmem %s2662_s0, %s1820_s30 }
  0x1a   : > { %v222_v9 = vld [vmem:[%s220_s7] sm:$0xf]  ;;  %v224_v10 = vld [vmem:[%s220_s7 + $0x8] sm:$0xf]  ;;  %v226_v11 = vld [vmem:[%s220_s7 + $0x10] sm:$0xf] }
  0x1b   : > { %v228_v12 = vld [vmem:[%s220_s7 + $0x18] sm:$0xf]  ;;  %v250_v13 = vpack.i.b16 %v224_v10, %v222_v9  ;;  %v251_v14 = vshrl.u32 %v222_v9, 16  ;;  %v252_v15 = vshrl.u32 %v224_v10, 16  ;;  %v257_v16 = vshrl.u32 %v226_v11, 16 }
  0x1c   : > { %v256_v17 = vpack.i.b16 %v228_v12, %v226_v11  ;;  %v258_v18 = vshrl.u32 %v228_v12, 16  ;;  %v223_v20 = vld [vmem:[%s220_s7 + $0x4] sm:$0xf]  ;;  %v225_v21 = vld [vmem:[%s220_s7 + $0xc] sm:$0xf]  ;;  %v515_v9 = vcombine.low %v2076_v7, %v2076_v7  ;;  %v516_v10 = vcombine.high %v2076_v7, %v2076_v7 }
  0x1d   : > { %v279_v22 = vrot.slane %v250_v13, %v2166_v8  ;;  %v253_v23 = vpack.i.b16 %v252_v15, %v251_v14  ;;  %v227_v24 = vld [vmem:[%s220_s7 + $0x14] sm:$0xf]  ;;  %v229_v25 = vld [vmem:[%s220_s7 + $0x1c] sm:$0xf]  ;;  %v262_v26 = vpack.i.b16 %v225_v21, %v223_v20  ;;  %v263_v27 = vshrl.u32 %v223_v20, 16 }
  0x1e   : > { %v287_v28 = vrot.slane %v256_v17, %v2166_v8  ;;  %v259_v29 = vpack.i.b16 %v258_v18, %v257_v16  ;;  %v268_v30 = vpack.i.b16 %v229_v25, %v227_v24  ;;  %v264_v31 = vshrl.u32 %v225_v21, 16 }
  0x1f   : > { %v313_v32 = vrot.slane %v253_v23, %v2166_v8  ;;  %v347_v33 = vrot.slane %v262_v26, %v2166_v8  ;;  %v269_v34 = vshrl.u32 %v227_v24, 16  ;;  %v270_v35 = vshrl.u32 %v229_v25, 16 }
  0x20   : > { %v289_v36 = vcombine.high %v279_v22, %v287_v28  ;;  %v288_v37 = vcombine.low %v279_v22, %v287_v28  ;;  %v321_v38 = vrot.slane %v259_v29, %v2166_v8  ;;  %v355_v39 = vrot.slane %v268_v30, %v2166_v8 }
  0x21   : > { %v265_v40 = vpack.i.b16 %v264_v31, %v263_v27  ;;  %v271_v41 = vpack.i.b16 %v270_v35, %v269_v34  ;;  %v523_v11 = vrot.slane %v515_v9, %v2166_v8  ;;  %v530_v12 = vrot.slane %v516_v10, %v2166_v8 }
  0x22   : > { %v303_v42 = vrot.slane %v289_v36, %v2168_v19  ;;  %v2178_v43 = vrot.slane %v288_v37, %v2168_v19  ;;  %v322_v44 = vcombine.low %v313_v32, %v321_v38  ;;  %v356_v45 = vcombine.low %v347_v33, %v355_v39 }
  0x23   : > { %v381_v46 = vrot.slane %v265_v40, %v2166_v8  ;;  %v389_v47 = vrot.slane %v271_v41, %v2166_v8  ;;  %v357_v48 = vcombine.high %v347_v33, %v355_v39  ;;  %v323_v58 = vcombine.high %v313_v32, %v321_v38 }
  0x24   : > { %v1777_v49 = vcombine.low %v303_v42, %v303_v42  ;;  %v1821_v50 = vcombine.high %v2178_v43, %v2178_v43  ;;  %v330_v51 = vrot.slane %v322_v44, %v2168_v19  ;;  %v2186_v52 = vrot.slane %v356_v45, %v2168_v19 }
  0x25   : > { %v390_v53 = vcombine.low %v381_v46, %v389_v47  ;;  %v371_v56 = vrot.slane %v357_v48, %v2168_v19  ;;  %v391_v61 = vcombine.high %v381_v46, %v389_v47  ;;  %v337_v62 = vrot.slane %v323_v58, %v2168_v19 }
  0x26   : > { %426 = vrot.lane.b32.xlu0 %v1777_v49, %s2070_s8  ;;  %416 = vrot.lane.b32.xlu1 %v1821_v50, %s2071_s9  ;;  %v1774_v54 = vcombine.low %v330_v51, %v330_v51  ;;  %v1825_v55 = vcombine.high %v2186_v52, %v2186_v52  ;;  %v1822_v63 = vcombine.high %v330_v51, %v330_v51 }
  0x27   : > { %v398_v57 = vrot.slane %v390_v53, %v2168_v19  ;;  %v1784_v60 = vcombine.low %v371_v56, %v371_v56  ;;  %v405_v1 = vrot.slane %v391_v61, %v2168_v19  ;;  %v1778_v2 = vcombine.low %v337_v62, %v337_v62  ;;  %v1979_v61 = vld [vmem:[%s2663_s1] sm:$0xff]  }
  0x28   : > { %v1823_v5 = vcombine.high %v303_v42, %v303_v42  ;;  %v1827_v6 = vcombine.high %v371_v56, %v371_v56  ;;  %v1824_v13 = vcombine.high %v337_v62, %v337_v62  ;;  %v531_v15 = vcombine.low %v523_v11, %v523_v11 }
  0x29   : > { %v1781_v59 = vcombine.low %v398_v57, %v398_v57  ;;  %v1826_v0 = vcombine.high %v398_v57, %v398_v57  ;;  %v1785_v3 = vcombine.low %v405_v1, %v405_v1  ;;  %v1828_v14 = vcombine.high %v405_v1, %v405_v1 }
  0x2a   : > { %411 = vrot.lane.b32.xlu0 %v1774_v54, %s2667_s10  ;;  %451 = vrot.lane.b32.xlu1 %v1825_v55, %s2071_s9  ;;  %v532_v16 = vcombine.high %v523_v11, %v523_v11  ;;  %v547_v17 = vcombine.low %v530_v12, %v530_v12  ;;  %v2209_v18 = vrot.slane %v531_v15, %v2168_v19 }
  0x2b   : > { %v548_v22 = vcombine.high %v530_v12, %v530_v12 }
  0x2c   : > { %v546_v20 = vrot.slane %v532_v16, %v2168_v19  ;;  %v555_v21 = vrot.slane %v547_v17, %v2168_v19  ;;  %v564_v23 = vcombine.high %v2209_v18, %v2209_v18 }
  0x2d   : > { %v562_v27 = vrot.slane %v548_v22, %v2168_v19  ;;  %v1465_v22 = vld [vmem:[%s2665_s3 + $0x8] sm:$0xff] }
  0x2e   : > { %446 = vrot.lane.b32.xlu0 %v1781_v59, %s2667_s10  ;;  %461 = vrot.lane.b32.xlu1 %v1784_v60, %s2070_s8  ;;  %v565_v24 = vcombine.low %v546_v20, %v546_v20  ;;  %v566_v25 = vcombine.high %v546_v20, %v546_v20  ;;  %v567_v26 = vcombine.low %v555_v21, %v555_v21 }
  0x2f   : > { %v568_v28 = vcombine.high %v555_v21, %v555_v21  ;;  %v569_v29 = vcombine.low %v562_v27, %v562_v27  ;;  %v570_v30 = vcombine.high %v562_v27, %v562_v27  ;;  %v563_v59 = vcombine.low %v2209_v18, %v2209_v18  ;;  %v1467_v27 = vld [vmem:[%s2665_s3 + $0x18] sm:$0xff] }
  0x32   : > { %421 = vrot.lane.b32.xlu0 %v1822_v63, %s2073_s11  ;;  %456 = vrot.lane.b32.xlu1 %v1826_v0, %s2073_s11 }
  0x36   : > { %431 = vrot.lane.b32.xlu0 %v1778_v2, %s2075_s12  ;;  %466 = vrot.lane.b32.xlu1 %v1785_v3, %s2075_s12 }
  0x3a   : > { %436 = vrot.lane.b32.xlu0 %v1823_v5, %s2077_s13  ;;  %471 = vrot.lane.b32.xlu1 %v1827_v6, %s2077_s13 }
  0x3e   : > { %441 = vrot.lane.b32.xlu0 %v1824_v13, %s2078_s14  ;;  %476 = vrot.lane.b32.xlu1 %v1828_v14, %s2078_s14 }
  0x42   : > { %572 = vrot.lane.b32.xlu0 %v564_v23, %s2667_s10  ;;  %576 = vrot.lane.b32.xlu1 %v565_v24, %s2071_s9  ;;  %v1464_v23 = vld [vmem:[%s2665_s3] sm:$0xff] }
  0x43   : > { %v1468_v24 = vld [vmem:[%s2665_s3 + $0x20] sm:$0xff] }
  0x46   : > { %580 = vrot.lane.b32.xlu0 %v566_v25, %s2073_s11  ;;  %584 = vrot.lane.b32.xlu1 %v567_v26, %s2070_s8  ;;  %v1466_v25 = vld [vmem:[%s2665_s3 + $0x10] sm:$0xff] }
  0x47   : > { %v1470_v26 = vld [vmem:[%s2665_s3 + $0x30] sm:$0xff] }
  0x4a   : > { %588 = vrot.lane.b32.xlu0 %v568_v28, %s2075_s12  ;;  %592 = vrot.lane.b32.xlu1 %v569_v29, %s2077_s13  ;;  %v1472_v28 = vld [vmem:[%s2665_s3 + $0x40] sm:$0xff]  ;;  %v1469_v29 = vld [vmem:[%s2665_s3 + $0x28] sm:$0xff] }
  0x4e   : > { %596 = vrot.lane.b32.xlu0 %v570_v30, %s2078_s14  ;;  %v1474_v30 = vld [vmem:[%s2665_s3 + $0x50] sm:$0xff] }
  0x98   : > { %v427_v31 = vpop.permute.xlu0 %426  ;;  %v417_v32 = vpop.permute.xlu1 %416 }
  0x9c   : > { %v412_v33 = vpop.permute.xlu0 %411  ;;  %v452_v34 = vpop.permute.xlu1 %451 }
  0x9d   : > { %v481_v39 = vsel %vm478_vm0, %v2178_v43, %v412_v33  ;;  %v1475_v33 = vld [vmem:[%s2665_s3 + $0x58] sm:$0xff] }
  0x9e   : > { %v484_v44 = vsel %vm482_vm1, %v481_v39, %v417_v32  ;;  %v1473_v32 = vld [vmem:[%s2665_s3 + $0x48] sm:$0xff]  ;;  %v1478_v39 = vld [vmem:[%s2665_s3 + $0x70] sm:$0xff] }
  0xa0   : > { %v447_v35 = vpop.permute.xlu0 %446  ;;  %v462_v36 = vpop.permute.xlu1 %461 }
  0xa1   : > { %v502_v40 = vsel %vm478_vm0, %v2186_v52, %v447_v35  ;;  %v1981_v35 = vld [vmem:[%s2664_s2 + $0x10] sm:$0xff]  }
  0xa2   : > { %v504_v45 = vsel %vm482_vm1, %v502_v40, %v452_v34  ;;  %v1980_v34 = vld [vmem:[%s2664_s2] sm:$0xff]   ;;  %1882 = vmatprep.mubr.bf16.mxu1 %v1981_v35 }
  0xa4   : > { %v422_v37 = vpop.permute.xlu0 %421  ;;  %v457_v38 = vpop.permute.xlu1 %456 }
  0xa5   : > { %v487_v46 = vsel %vm485_vm2, %v484_v44, %v422_v37  ;;  %v506_v47 = vsel %vm485_vm2, %v504_v45, %v457_v38  ;;  %v1476_v37 = vld [vmem:[%s2665_s3 + $0x60] sm:$0xff]  ;;  %v1479_v38 = vld [vmem:[%s2665_s3 + $0x78] sm:$0xff] }
  0xa6   : > { %v490_v43 = vsel %vm488_vm3, %v487_v46, %v427_v31  ;;  %v508_v50 = vsel %vm488_vm3, %v506_v47, %v462_v36  ;;  %v1471_v31 = vld [vmem:[%s2665_s3 + $0x38] sm:$0xff]  ;;  %v1477_v36 = vld [vmem:[%s2665_s3 + $0x68] sm:$0xff] }
  0xa8   : > { %v432_v41 = vpop.permute.xlu0 %431  ;;  %v467_v42 = vpop.permute.xlu1 %466 }
  0xa9   : > { %v493_v51 = vsel %vm491_vm4, %v490_v43, %v432_v41  ;;  %v510_v52 = vsel %vm491_vm4, %v508_v50, %v467_v42 }
  0xac   : > { %v437_v48 = vpop.permute.xlu0 %436  ;;  %v472_v49 = vpop.permute.xlu1 %471 }
  0xad   : > { %v496_v53 = vsel %vm494_vm5, %v493_v51, %v437_v48  ;;  %v512_v54 = vsel %vm494_vm5, %v510_v52, %v472_v49 }
  0xb0   : > { %v442_v55 = vpop.permute.xlu0 %441  ;;  %v477_v56 = vpop.permute.xlu1 %476 }
  0xb1   : > { %v514_v57 = vsel %vm497_vm6, %v512_v54, %v477_v56  ;;  %v499_v58 = vsel %vm497_vm6, %v496_v53, %v442_v55 }
  0xb2   : > { %1789 = vmatprep.subr.msk.bf16.mxu0 %vm615_vm7, %v514_v57  ;;  %v616_v60 = vsel %vm615_vm7, %v499_v58, 0 }
  0xb3   : > { %621 = vmatpush1.bf16.msra.mxu0 %v616_v60 }
  0xb4   : > { %v573_v62 = vpop.permute.xlu0 %572  ;;  %v577_v63 = vpop.permute.xlu1 %576 }
  0xb5   : > { %v599_v0 = vsel %vm478_vm0, %v563_v59, %v573_v62 }
  0xb6   : > { %1790 = vmatmul.mubr.msk.bf16.vlgmr.msra.gmra.mrb[0].mxu0 %vm611_vm8, %v1979_v61  ;;  %v600_v1 = vsel %vm482_vm1, %v599_v0, %v577_v63 }
  0xb7   : > { %1878 = vmatprep.mubr.bf16.mxu0 %v1980_v34 }
  0xb8   : > { %v581_v2 = vpop.permute.xlu0 %580  ;;  %v585_v3 = vpop.permute.xlu1 %584 }
  0xb9   : > { %v601_v4 = vsel %vm485_vm2, %v600_v1, %v581_v2 }
  0xba   : > { %v602_v5 = vsel %vm488_vm3, %v601_v4, %v585_v3 }
  0xbc   : > { %v589_v6 = vpop.permute.xlu0 %588  ;;  %v593_v7 = vpop.permute.xlu1 %592 }
  0xbd   : > { %v603_v9 = vsel %vm491_vm4, %v602_v5, %v589_v6 }
  0xbe   : > { %v604_v10 = vsel %vm494_vm5, %v603_v9, %v593_v7 }
  0xc0   : > { %v597_v11 = vpop.permute.xlu0 %596 }
  0xc1   : > { %v605_v12 = vsel %vm497_vm6, %v604_v10, %v597_v11 }
 0x189   : > { %v654_v13 = vpop.f32.mrb[0].mxu0 }
 0x18a   : > { %v2253_v14 = vadd.f32 %v654_v13, %v605_v12  ;;  %v656_v15 = vpop.f32.mrb[1].mxu0 }
 0x18b   : > { %v2255_v16 = vadd.f32 %v656_v15, %v605_v12  ;;  %v658_v17 = vpop.f32.mrb[2].mxu0 }
 0x18c   : > { %v2257_v18 = vadd.f32 %v658_v17, %v605_v12  ;;  %v660_v20 = vpop.f32.mrb[3].mxu0  ;;  %671 = vrot.lane.b32.xlu0 %v2253_v14, %s2077_s13  ;;  %665 = vrot.lane.b32.xlu1 %v2253_v14, %s2078_s14 }
 0x18d   : > { %v2263_v21 = vadd.f32 %v660_v20, %v605_v12 }
 0x190   : > { %683 = vrot.lane.b32.xlu0 %v2253_v14, %s2070_s8  ;;  %677 = vrot.lane.b32.xlu1 %v2253_v14, %s2075_s12 }
 0x194   : > { %695 = vrot.lane.b32.xlu0 %v2253_v14, %s2071_s9  ;;  %689 = vrot.lane.b32.xlu1 %v2253_v14, %s2073_s11 }
 0x198   : > { %709 = vrot.lane.b32.xlu0 %v2255_v16, %s2078_s14  ;;  %701 = vrot.lane.b32.xlu1 %v2253_v14, %s2667_s10 }
 0x19c   : > { %721 = vrot.lane.b32.xlu0 %v2255_v16, %s2075_s12  ;;  %715 = vrot.lane.b32.xlu1 %v2255_v16, %s2077_s13 }
 0x1a0   : > { %733 = vrot.lane.b32.xlu0 %v2255_v16, %s2073_s11  ;;  %727 = vrot.lane.b32.xlu1 %v2255_v16, %s2070_s8 }
 0x1a4   : > { %745 = vrot.lane.b32.xlu0 %v2255_v16, %s2667_s10  ;;  %739 = vrot.lane.b32.xlu1 %v2255_v16, %s2071_s9  ;;  %s2671_s10 = smov 16  }
 0x1a8   : > { %1487 = vperm.xlu0 %1978, %v1465_v22   ;;  %1482 = vperm.xlu1 %1977, %v1464_v23  }
 0x1ac   : > { %1502 = vperm.xlu0 %1978, %v1468_v24   ;;  %1492 = vperm.xlu1 %1977, %v1466_v25  }
 0x1b0   : > { %1512 = vperm.xlu0 %1978, %v1470_v26   ;;  %1497 = vperm.xlu1 %1977, %v1467_v27  }
 0x1b4   : > { %1522 = vperm.xlu0 %1978, %v1472_v28   ;;  %1507 = vperm.xlu1 %1977, %v1469_v29  }
 0x1b8   : > { %1532 = vperm.xlu0 %1978, %v1474_v30   ;;  %1517 = vperm.xlu1 %1977, %v1471_v31  }
 0x1bc   : > { %673 = vrot.lane.b32.xlu0 %v2257_v18, %s2077_s13  ;;  %1527 = vperm.xlu1 %1977, %v1473_v32  }
 0x1c0   : > { %685 = vrot.lane.b32.xlu0 %v2257_v18, %s2070_s8  ;;  %1537 = vperm.xlu1 %1977, %v1475_v33  }
 0x1c4   : > { %697 = vrot.lane.b32.xlu0 %v2257_v18, %s2071_s9  ;;  %667 = vrot.lane.b32.xlu1 %v2257_v18, %s2078_s14 }
 0x1c8   : > { %711 = vrot.lane.b32.xlu0 %v2263_v21, %s2078_s14  ;;  %679 = vrot.lane.b32.xlu1 %v2257_v18, %s2075_s12 }
 0x1cc   : > { %723 = vrot.lane.b32.xlu0 %v2263_v21, %s2075_s12  ;;  %691 = vrot.lane.b32.xlu1 %v2257_v18, %s2073_s11 }
 0x1d0   : > { %735 = vrot.lane.b32.xlu0 %v2263_v21, %s2073_s11  ;;  %703 = vrot.lane.b32.xlu1 %v2257_v18, %s2671_s10 }
 0x1d4   : > { %747 = vrot.lane.b32.xlu0 %v2263_v21, %s2671_s10  ;;  %717 = vrot.lane.b32.xlu1 %v2263_v21, %s2077_s13  ;;  %s1771_s13 = sshll.u32 %s210_s26, 6  ;;  %s2079_s10 = smov [#allocation2]  }
 0x1d5   : > { %s2546_s29 = scalar_lea.vmem [#allocation2], %s1771_s13  ;;  %s1992_s12 = sshll.u32 %s2079_s10, 4  ;;  %s1993_s12 = int_to_ptr.vmem [resolvable:$false] %s1992_s12 }
 0x1d6   : > { %s1688_s30 = sshll.u32 %s2546_s29, 4  ;;  %s1994_s14 = scalar_lea.vmem %s1993_s12, 2048  ;;  %s2606_s30 = int_to_ptr.vmem [resolvable:$true] %s1688_s30 }
 0x1d7   : > { %s1988_s21 = scalar_lea.vmem %s2606_s30, 1024  ;;  %p1995_p1 = scmp.lt.s32.totalorder %s2606_s30, %s1993_s12 }
 0x1d8   : > { %729 = vrot.lane.b32.xlu1 %v2263_v21, %s2070_s8  ;;  %1542 = vperm.xlu0 %1978, %v1476_v37   ;;  %p1989_p12 = scmp.ne.s32.totalorder %s2606_s30, %s1988_s21  ;;  %p1996_p2 = scmp.lt.s32.totalorder %s1994_s14, %s1988_s21 }
 0x1da   : > { %p1990_p13 = pnand %p1989_p12, %p2146_p4  ;;  %p1997_p3 = por %p1996_p2, %p1995_p1 }
 0x1dc   : > { %741 = vrot.lane.b32.xlu1 %v2263_v21, %s2071_s9  ;;  %1552 = vperm.xlu0 %1978, %v1478_v39   ;;  %s1845_s9 = sshll.u32 %s2058_s18, 10  ;;  %s2614_s18 = scalar_lea.sflag [#allocation3], %s210_s26 }
 0x1dd   : > { %s2602_s7 = scalar_lea.hbm %s2666_s4, %s1845_s9  ;;  %p1991_p0 = pneg %p1990_p13 }
 0x1df   : > { %p1998_p5 = pnand %p1997_p3, %p1991_p0 }
 0x1e0   : > { %1547 = vperm.xlu1 %1977, %v1477_v36  }
 0x1e4   : > { %1557 = vperm.xlu1 %1977, %v1479_v38  }
 0x1fe   : > { %v2371_v40 = vpop.permute.xlu0 %671  ;;  %v2373_v41 = vpop.permute.xlu1 %665 }
 0x1ff   : > { %v751_v55 = vcombine.low %v2253_v14, %v2371_v40 }
 0x201   : > { %v759_v63 = vrot.slane %v751_v55, %v2166_v8 }
 0x202   : > { %v2375_v42 = vpop.permute.xlu0 %683  ;;  %v678_v44 = vpop.permute.xlu1 %677 }
 0x203   : > { %v767_v51 = vcombine.low %v2373_v41, %v678_v44  ;;  %v768_v12 = vcombine.high %v2373_v41, %v678_v44 }
 0x205   : > { %v775_v59 = vrot.slane %v767_v51, %v2166_v8 }
 0x206   : > { %v696_v45 = vpop.permute.xlu0 %695  ;;  %v690_v46 = vpop.permute.xlu1 %689 }
 0x207   : > { %v783_v52 = vcombine.low %v2375_v42, %v696_v45  ;;  %v815_v5 = vcombine.low %v759_v63, %v775_v59  ;;  %v816_v29 = vcombine.high %v759_v63, %v775_v59  ;;  %v784_v30 = vcombine.high %v2375_v42, %v696_v45 }
 0x209   : > { %v791_v60 = vrot.slane %v783_v52, %v2166_v8  ;;  %v823_v20 = vrot.slane %v815_v5, %v2168_v19 }
 0x20a   : > { %v710_v47 = vpop.permute.xlu0 %709  ;;  %v702_v48 = vpop.permute.xlu1 %701 }
 0x20b   : > { %v799_v49 = vcombine.low %v690_v46, %v702_v48  ;;  %v800_v22 = vcombine.high %v690_v46, %v702_v48  ;;  %v782_v46 = vrot.slane %v768_v12, %v2166_v8  ;;  %v798_v48 = vrot.slane %v784_v30, %v2166_v8 }
 0x20d   : > { %v807_v56 = vrot.slane %v799_v49, %v2166_v8  ;;  %v814_v37 = vrot.slane %v800_v22, %v2166_v8 }
 0x20e   : > { %v722_v43 = vpop.permute.xlu0 %721  ;;  %v716_v50 = vpop.permute.xlu1 %715 }
 0x20f   : > { %v903_v53 = vcombine.low %v710_v47, %v722_v43  ;;  %v887_v54 = vcombine.low %v2255_v16, %v716_v50  ;;  %v847_v0 = vcombine.low %v791_v60, %v807_v56  ;;  %v848_v23 = vcombine.high %v791_v60, %v807_v56 }
 0x210   : > { %v904_v24 = vcombine.high %v710_v47, %v722_v43  ;;  %v888_v25 = vcombine.high %v2255_v16, %v716_v50  ;;  %v752_v16 = vcombine.high %v2253_v14, %v2371_v40  ;;  %v830_v47 = vrot.slane %v816_v29, %v2168_v19  ;;  %v1987_v29 = vld [vmem:[%s2664_s2 + $0x38] sm:$0xff]  }
 0x211   : > { %v911_v61 = vrot.slane %v903_v53, %v2166_v8  ;;  %v895_v62 = vrot.slane %v887_v54, %v2166_v8  ;;  %v855_v10 = vrot.slane %v847_v0, %v2168_v19  ;;  %v862_v38 = vrot.slane %v848_v23, %v2168_v19 }
 0x212   : > { %v734_v57 = vpop.permute.xlu0 %733  ;;  %v728_v58 = vpop.permute.xlu1 %727  ;;  %v918_v39 = vrot.slane %v904_v24, %v2166_v8  ;;  %v902_v41 = vrot.slane %v888_v25, %v2166_v8  ;;  %v766_v43 = vrot.slane %v752_v16, %v2166_v8  ;;  %v863_v50 = vcombine.low %v798_v48, %v814_v37  ;;  %v1982_v24 = vld [vmem:[%s2664_s2 + $0x8] sm:$0xff]   ;;  %v1983_v25 = vld [vmem:[%s2664_s2 + $0x18] sm:$0xff]  }
 0x213   : > { %v951_v6 = vcombine.low %v895_v62, %v911_v61  ;;  %v952_v26 = vcombine.high %v895_v62, %v911_v61  ;;  %v879_v32 = vcombine.low %v823_v20, %v855_v10  ;;  %v880_v45 = vcombine.high %v823_v20, %v855_v10 }
 0x214   : > { %v967_v51 = vcombine.low %v902_v41, %v918_v39  ;;  %v881_v52 = vcombine.low %v830_v47, %v862_v38  ;;  %v831_v53 = vcombine.low %v766_v43, %v782_v46  ;;  %v882_v59 = vcombine.high %v830_v47, %v862_v38 }
 0x215   : > { %v959_v27 = vrot.slane %v951_v6, %v2168_v19  ;;  %v966_v42 = vrot.slane %v952_v26, %v2168_v19  ;;  %v864_v0 = vcombine.high %v798_v48, %v814_v37  ;;  %v1984_v26 = vld [vmem:[%s2664_s2 + $0x20] sm:$0xff]  }
 0x216   : > { %v746_v1 = vpop.permute.xlu0 %745  ;;  %v740_v2 = vpop.permute.xlu1 %739  ;;  %v839_v60 = vrot.slane %v831_v53, %v2168_v19 }
 0x217   : > { %v935_v3 = vcombine.low %v734_v57, %v746_v1  ;;  %v919_v4 = vcombine.low %v728_v58, %v740_v2  ;;  %v936_v11 = vcombine.high %v734_v57, %v746_v1  ;;  %v920_v13 = vcombine.high %v728_v58, %v740_v2 }
 0x218   : > { %v871_v57 = vrot.slane %v863_v50, %v2168_v19  ;;  %v975_v58 = vrot.slane %v967_v51, %v2168_v19  ;;  %v968_v1 = vcombine.high %v902_v41, %v918_v39 }
 0x219   : > { %v943_v7 = vrot.slane %v935_v3, %v2166_v8  ;;  %v927_v9 = vrot.slane %v919_v4, %v2166_v8  ;;  %v950_v31 = vrot.slane %v936_v11, %v2166_v8  ;;  %v934_v33 = vrot.slane %v920_v13, %v2166_v8 }
 0x21a   : > { %v883_v2 = vcombine.low %v839_v60, %v871_v57  ;;  %v832_v3 = vcombine.high %v766_v43, %v782_v46  ;;  %v884_v10 = vcombine.high %v839_v60, %v871_v57 }
 0x21b   : > { %v983_v15 = vcombine.low %v927_v9, %v943_v7  ;;  %v984_v17 = vcombine.high %v927_v9, %v943_v7  ;;  %v999_v49 = vcombine.low %v934_v33, %v950_v31  ;;  %v1000_v61 = vcombine.high %v934_v33, %v950_v31 }
 0x21c   : > { %v878_v7 = vrot.slane %v864_v0, %v2168_v19  ;;  %v982_v9 = vrot.slane %v968_v1, %v2168_v19  ;;  %v846_v11 = vrot.slane %v832_v3, %v2168_v19 }
 0x21d   : > { %v991_v28 = vrot.slane %v983_v15, %v2168_v19  ;;  %v998_v34 = vrot.slane %v984_v17, %v2168_v19  ;;  %v1007_v54 = vrot.slane %v999_v49, %v2168_v19  ;;  %v1014_v4 = vrot.slane %v1000_v61, %v2168_v19 }
 0x21e   : > { %v885_v15 = vcombine.low %v846_v11, %v878_v7  ;;  %v886_v22 = vcombine.high %v846_v11, %v878_v7 }
 0x21f   : > { %v1015_v35 = vcombine.low %v959_v27, %v991_v28  ;;  %v1016_v36 = vcombine.high %v959_v27, %v991_v28  ;;  %v1017_v40 = vcombine.low %v966_v42, %v998_v34  ;;  %v1018_v56 = vcombine.high %v966_v42, %v998_v34  ;;  %v1985_v27 = vld [vmem:[%s2664_s2 + $0x28] sm:$0xff]   ;;  %v1986_v28 = vld [vmem:[%s2664_s2 + $0x30] sm:$0xff]  }
 0x220   : > { %v1019_v63 = vcombine.low %v975_v58, %v1007_v54  ;;  %v1020_v6 = vcombine.high %v975_v58, %v1007_v54  ;;  %v1021_v13 = vcombine.low %v982_v9, %v1014_v4  ;;  %v1022_v20 = vcombine.high %v982_v9, %v1014_v4 }
 0x221   : > { %v1295_v44 = vpack.c.bf16 %v1015_v35, %v879_v32  ;;  %v1296_v14 = vpack.c.bf16 %v1016_v36, %v880_v45  ;;  %v1297_v55 = vpack.c.bf16 %v1017_v40, %v881_v52  ;;  %v1298_v62 = vpack.c.bf16 %v1018_v56, %v882_v59 }
 0x222   : > { %v1299_v5 = vpack.c.bf16 %v1019_v63, %v883_v2  ;;  %v1300_v12 = vpack.c.bf16 %v1020_v6, %v884_v10  ;;  %v1301_v17 = vpack.c.bf16 %v1021_v13, %v885_v15  ;;  %v1302_v23 = vpack.c.bf16 %v1022_v20, %v886_v22 }
 0x223   : > { %1862 = vmatprep.subr.bf16.mxu0 %v1295_v44  ;;  %1894 = vmatprep.subr.bf16.mxu1 %v1295_v44 }
 0x224   : > { %1863 = vmatpush3.bf16.msra.mxu0 %v1295_v44  ;;  %1902 = vmatpush3.bf16.msra.mxu1 %v1295_v44 }
 0x225   : > { %1864 = vmatprep.subr.bf16.mxu0 %v1296_v14  ;;  %1895 = vmatprep.subr.bf16.mxu1 %v1296_v14 }
 0x227   : > { %v2437_v30 = vpop.permute.xlu1 %1482  ;;  %v2443_v33 = vpop.permute.xlu0 %1487 }
 0x228   : > { %1865 = vmatpush3.bf16.msra.mxu0 %v1296_v14  ;;  %1903 = vmatpush3.bf16.msra.mxu1 %v1296_v14 }
 0x229   : > { %1866 = vmatprep.subr.bf16.mxu0 %v1297_v55  ;;  %1896 = vmatprep.subr.bf16.mxu1 %v1297_v55 }
 0x22b   : > { %v2439_v31 = vpop.permute.xlu1 %1492  ;;  %v2447_v35 = vpop.permute.xlu0 %1502 }
 0x22c   : > { %1867 = vmatpush3.bf16.msra.mxu0 %v1297_v55  ;;  %1904 = vmatpush3.bf16.msra.mxu1 %v1297_v55 }
 0x22d   : > { %1868 = vmatprep.subr.bf16.mxu0 %v1298_v62  ;;  %1897 = vmatprep.subr.bf16.mxu1 %v1298_v62 }
 0x22f   : > { %v2441_v32 = vpop.permute.xlu1 %1497  ;;  %v2451_v16 = vpop.permute.xlu0 %1512 }
 0x230   : > { %1869 = vmatpush3.bf16.msra.mxu0 %v1298_v62  ;;  %1905 = vmatpush3.bf16.msra.mxu1 %v1298_v62 }
 0x231   : > { %1870 = vmatprep.subr.bf16.mxu0 %v1299_v5  ;;  %1898 = vmatprep.subr.bf16.mxu1 %v1299_v5 }
 0x233   : > { %v2445_v34 = vpop.permute.xlu1 %1507  ;;  %v2455_v38 = vpop.permute.xlu0 %1522 }
 0x234   : > { %1871 = vmatpush3.bf16.msra.mxu0 %v1299_v5  ;;  %1906 = vmatpush3.bf16.msra.mxu1 %v1299_v5 }
 0x235   : > { %1872 = vmatprep.subr.bf16.mxu0 %v1300_v12  ;;  %1899 = vmatprep.subr.bf16.mxu1 %v1300_v12 }
 0x237   : > { %v2449_v36 = vpop.permute.xlu1 %1517  ;;  %v2459_v41 = vpop.permute.xlu0 %1532 }
 0x238   : > { %1873 = vmatpush3.bf16.msra.mxu0 %v1300_v12  ;;  %1907 = vmatpush3.bf16.msra.mxu1 %v1300_v12 }
 0x239   : > { %1874 = vmatprep.subr.bf16.mxu0 %v1301_v17  ;;  %1900 = vmatprep.subr.bf16.mxu1 %v1301_v17 }
 0x23b   : > { %v2453_v37 = vpop.permute.xlu1 %1527  ;;  %v674_v44 = vpop.permute.xlu0 %673 }
 0x23c   : > { %1875 = vmatpush3.bf16.msra.mxu0 %v1301_v17  ;;  %1908 = vmatpush3.bf16.msra.mxu1 %v1301_v17  ;;  %v1023_v54 = vcombine.low %v2257_v18, %v674_v44  ;;  %v1024_v63 = vcombine.high %v2257_v18, %v674_v44 }
 0x23d   : > { %1876 = vmatprep.subr.bf16.mxu0 %v1302_v23  ;;  %1901 = vmatprep.subr.bf16.mxu1 %v1302_v23 }
 0x23e   : > { %v1031_v2 = vrot.slane %v1023_v54, %v2166_v8 }
 0x23f   : > { %v2457_v39 = vpop.permute.xlu1 %1537  ;;  %v686_v46 = vpop.permute.xlu0 %685 }
 0x240   : > { %1877 = vmatpush3.bf16.msra.mxu0 %v1302_v23  ;;  %1909 = vmatpush3.bf16.msra.mxu1 %v1302_v23  ;;  %v2482_v23 = vrot.slane %v1024_v63, %v2166_v8 }
 0x243   : > { %1879 = vmatmul.mubr.bf16.vlgmr.msra.gmra.mrb[4].mxu0 %v1982_v24  ;;  %1883 = vmatmul.mubr.bf16.vlgmr.msra.gmra.mrb[0].mxu1 %v1983_v25  ;;  %v668_v42 = vpop.permute.xlu1 %667  ;;  %v698_v48 = vpop.permute.xlu0 %697 }
 0x244   : > { %1886 = vmatprep.mubr.bf16.mxu1 %v1984_v26  ;;  %v1055_v55 = vcombine.low %v686_v46, %v698_v48  ;;  %v1056_v60 = vcombine.high %v686_v46, %v698_v48 }
 0x246   : > { %v1063_v3 = vrot.slane %v1055_v55, %v2166_v8  ;;  %v2474_v18 = vrot.slane %v1056_v60, %v2166_v8 }
 0x247   : > { %v680_v45 = vpop.permute.xlu1 %679  ;;  %v712_v14 = vpop.permute.xlu0 %711 }
 0x248   : > { %v1039_v56 = vcombine.low %v668_v42, %v680_v45  ;;  %v1040_v61 = vcombine.high %v668_v42, %v680_v45 }
 0x24a   : > { %v1047_v4 = vrot.slane %v1039_v56, %v2166_v8  ;;  %v2477_v11 = vrot.slane %v1040_v61, %v2166_v8 }
 0x24b   : > { %1887 = vmatmul.mubr.bf16.gmra.mrb[4].mxu1 %v1985_v27  ;;  %v692_v47 = vpop.permute.xlu1 %691  ;;  %v724_v43 = vpop.permute.xlu0 %723 }
 0x24c   : > { %1890 = vmatprep.mubr.bf16.mxu1 %v1986_v28  ;;  %v1175_v6 = vcombine.low %v712_v14, %v724_v43  ;;  %v1176_v12 = vcombine.high %v712_v14, %v724_v43  ;;  %v1088_v24 = vcombine.high %v1031_v2, %v1047_v4  ;;  %v1103_v42 = vcombine.low %v2482_v23, %v2477_v11 }
 0x24e   : > { %v1183_v26 = vrot.slane %v1175_v6, %v2166_v8  ;;  %v2496_v44 = vrot.slane %v1176_v12, %v2166_v8  ;;  %v2519_v56 = vrot.slane %v1103_v42, %v2168_v19 }
 0x24f   : > { %v704_v49 = vpop.permute.xlu1 %703  ;;  %v736_v51 = vpop.permute.xlu0 %735 }
 0x250   : > { %v1071_v52 = vcombine.low %v692_v47, %v704_v49  ;;  %v1072_v57 = vcombine.high %v692_v47, %v704_v49 }
 0x252   : > { %v1079_v62 = vrot.slane %v1071_v52, %v2166_v8  ;;  %v2469_v5 = vrot.slane %v1072_v57, %v2166_v8 }
 0x253   : > { %1891 = vmatmul.mubr.bf16.gmra.mrb[8].mxu1 %v1987_v29  ;;  %v718_v40 = vpop.permute.xlu1 %717  ;;  %v748_v58 = vpop.permute.xlu0 %747 }
 0x254   : > { %v1207_v0 = vcombine.low %v736_v51, %v748_v58  ;;  %v1159_v1 = vcombine.low %v2263_v21, %v718_v40  ;;  %v1160_v7 = vcombine.high %v2263_v21, %v718_v40  ;;  %v1119_v13 = vcombine.low %v1063_v3, %v1079_v62 }
 0x255   : > { %v1120_v15 = vcombine.high %v1063_v3, %v1079_v62  ;;  %v1208_v17 = vcombine.high %v736_v51, %v748_v58  ;;  %v1087_v21 = vcombine.low %v1031_v2, %v1047_v4  ;;  %v1135_v25 = vcombine.low %v2474_v18, %v2469_v5 }
 0x256   : > { %v1215_v20 = vrot.slane %v1207_v0, %v2166_v8  ;;  %v1167_v22 = vrot.slane %v1159_v1, %v2166_v8  ;;  %v2488_v27 = vrot.slane %v1160_v7, %v2166_v8  ;;  %v1127_v48 = vrot.slane %v1119_v13, %v2168_v19 }
 0x257   : > { %v730_v50 = vpop.permute.xlu1 %729  ;;  %v2499_v46 = vrot.slane %v1208_v17, %v2166_v8  ;;  %v1134_v49 = vrot.slane %v1120_v15, %v2168_v19  ;;  %v1095_v40 = vrot.slane %v1087_v21, %v2168_v19  ;;  %v2505_v43 = vrot.slane %v1135_v25, %v2168_v19 }
 0x258   : > { %v1223_v47 = vcombine.low %v1167_v22, %v1183_v26  ;;  %v1224_v14 = vcombine.high %v1167_v22, %v1183_v26  ;;  %v1136_v54 = vcombine.high %v2474_v18, %v2469_v5 }
 0x259   : > { %v1152_v57 = vcombine.high %v1095_v40, %v1127_v48  ;;  %v1156_v63 = vcombine.high %v2519_v56, %v2505_v43  ;;  %v1155_v0 = vcombine.low %v2519_v56, %v2505_v43 }
 0x25a   : > { %v1231_v60 = vrot.slane %v1223_v47, %v2168_v19  ;;  %v1238_v62 = vrot.slane %v1224_v14, %v2168_v19 }
 0x25b   : > { %v742_v53 = vpop.permute.xlu1 %741 }
 0x25c   : > { %v1191_v59 = vcombine.low %v730_v50, %v742_v53  ;;  %v1192_v9 = vcombine.high %v730_v50, %v742_v53  ;;  %v1239_v50 = vcombine.low %v2488_v27, %v2496_v44  ;;  %v1104_v53 = vcombine.high %v2482_v23, %v2477_v11 }
 0x25e   : > { %v1199_v10 = vrot.slane %v1191_v59, %v2166_v8  ;;  %v2491_v28 = vrot.slane %v1192_v9, %v2166_v8  ;;  %v1102_v8 = vrot.slane %v1088_v24, %v2168_v19  ;;  %v1151_v59 = vcombine.low %v1095_v40, %v1127_v48 }
 0x25f   : > { %v2531_v6 = vrot.slane %v1239_v50, %v2168_v19  ;;  %v1548_v18 = vpop.permute.xlu1 %1547 }
 0x260   : > { %v1255_v29 = vcombine.low %v1199_v10, %v1215_v20  ;;  %v1256_v45 = vcombine.high %v1199_v10, %v1215_v20  ;;  %v1271_v51 = vcombine.low %v2491_v28, %v2499_v46  ;;  %v1154_v58 = vcombine.high %v1102_v8, %v1134_v49 }
 0x261   : > { %v1153_v61 = vcombine.low %v1102_v8, %v1134_v49  ;;  %v1272_v1 = vcombine.high %v2491_v28, %v2499_v46 }
 0x262   : > { %v1263_v52 = vrot.slane %v1255_v29, %v2168_v19  ;;  %v1270_v55 = vrot.slane %v1256_v45, %v2168_v19  ;;  %v2534_v7 = vrot.slane %v1271_v51, %v2168_v19 }
 0x263   : > { %v1286_v5 = vrot.slane %v1272_v1, %v2168_v19 }
 0x264   : > { %v1288_v4 = vcombine.high %v1231_v60, %v1263_v52  ;;  %v1290_v15 = vcombine.high %v1238_v62, %v1270_v55  ;;  %v1287_v17 = vcombine.low %v1231_v60, %v1263_v52  ;;  %v1289_v25 = vcombine.low %v1238_v62, %v1270_v55 }
 0x316   : > { %v1880_v2 = vpop.f32.mrb[4].mxu0  ;;  %v1884_v3 = vpop.f32.mrb[0].mxu1 }
 0x317   : > { %v1450_v9 = vadd.f32 %v1880_v2, %v1152_v57  ;;  %v1454_v10 = vadd.f32 %v1884_v3, %v1154_v58  ;;  %v1385_v12 = vpop.f32.mrb[5].mxu0  ;;  %v1401_v13 = vpop.f32.mrb[1].mxu1  ;;  %v1292_v3 = vcombine.high %v2531_v6, %v2534_v7 }
 0x318   : > { %v1448_v20 = vadd.f32 %v1385_v12, %v1151_v59  ;;  %v1452_v22 = vadd.f32 %v1401_v13, %v1153_v61  ;;  %v1881_v21 = vpop.f32.mrb[6].mxu0  ;;  %v1885_v24 = vpop.f32.mrb[2].mxu1  ;;  %v1291_v13 = vcombine.low %v2531_v6, %v2534_v7 }
 0x319   : > { %v1562_v26 = vadd.f32 %v2439_v31, %v1450_v9  ;;  %v1566_v29 = vadd.f32 %v2451_v16, %v1454_v10  ;;  %v1451_v42 = vadd.f32 %v1881_v21, %v1288_v4  ;;  %v1455_v45 = vadd.f32 %v1885_v24, %v1290_v15  ;;  %v1388_v47 = vpop.f32.mrb[7].mxu0  ;;  %v1404_v48 = vpop.f32.mrb[3].mxu1 }
 0x31a   : > { %v1560_v49 = vadd.f32 %v2437_v30, %v1448_v20  ;;  %v1564_v14 = vadd.f32 %v2447_v35, %v1452_v22  ;;  %v1449_v40 = vadd.f32 %v1388_v47, %v1287_v17  ;;  %v1453_v43 = vadd.f32 %v1404_v48, %v1289_v25  ;;  %v1543_v22 = vpop.permute.xlu0 %1542 }
 0x31b   : > { %v1578_v50 = vmax.f32 %v1562_v26, 0.0  ;;  %v1582_v51 = vmax.f32 %v1566_v29, 0.0  ;;  %v1563_v8 = vadd.f32 %v2441_v32, %v1451_v42  ;;  %v1567_v52 = vadd.f32 %v2449_v36, %v1455_v45 }
 0x31c   : > { %v1576_v55 = vmax.f32 %v1560_v49, 0.0  ;;  %v1580_v31 = vmax.f32 %v1564_v14, 0.0  ;;  %v1561_v16 = vadd.f32 %v2443_v33, %v1449_v40  ;;  %v1565_v56 = vadd.f32 %v2445_v34, %v1453_v43  ;;  %v1558_v40 = vpop.permute.xlu1 %1557 }
 0x31d   : > { %v1831_v57 = vpack.c.bf16 %v1578_v50, %v1578_v50  ;;  %v1835_v58 = vpack.c.bf16 %v1582_v51, %v1582_v51  ;;  %v1579_v59 = vmax.f32 %v1563_v8, 0.0  ;;  %v1583_v30 = vmax.f32 %v1567_v52, 0.0 }
 0x31e   : > { %v1829_v60 = vpack.c.bf16 %v1576_v55, %v1576_v55  ;;  %v1833_v35 = vpack.c.bf16 %v1580_v31, %v1580_v31  ;;  %v1577_v61 = vmax.f32 %v1561_v16, 0.0  ;;  %v1581_v62 = vmax.f32 %v1565_v56, 0.0  ;;  %v1888_v2 = vpop.f32.mrb[4].mxu1  ;;  %v1553_v42 = vpop.permute.xlu0 %1552 }
 0x31f   : > { %1659 = vst.msk [vmem:[%s2546_s29 + $0x8] sm:$0xf] %vm1656_vm9, %v1831_v57  ;;  %1663 = vst.msk [vmem:[%s2546_s29 + $0x18] sm:$0xf] %vm1656_vm9, %v1835_v58  ;;  %v1832_v32 = vpack.c.bf16 %v1579_v59, %v1579_v59  ;;  %v1836_v33 = vpack.c.bf16 %v1583_v30, %v1583_v30  ;;  %v1458_v34 = vadd.f32 %v1888_v2, %v1156_v63  ;;  %v1417_v36 = vpop.f32.mrb[5].mxu1 }
 0x320   : > { %1657 = vst.msk [vmem:[%s2546_s29] sm:$0xf] %vm1656_vm9, %v1829_v60  ;;  %1661 = vst.msk [vmem:[%s2546_s29 + $0x10] sm:$0xf] %vm1656_vm9, %v1833_v35  ;;  %v1830_v4 = vpack.c.bf16 %v1577_v61, %v1577_v61  ;;  %v1834_v9 = vpack.c.bf16 %v1581_v62, %v1581_v62  ;;  %v1456_v10 = vadd.f32 %v1417_v36, %v1155_v0  ;;  %v1889_v12 = vpop.f32.mrb[6].mxu1 }
 0x321   : > { %v1240_v63 = vcombine.high %v2488_v27, %v2496_v44  ;;  %1660 = vst.msk [vmem:[%s2546_s29 + $0xc] sm:$0xf] %vm1656_vm9, %v1832_v32  ;;  %1664 = vst.msk [vmem:[%s2546_s29 + $0x1c] sm:$0xf] %vm1656_vm9, %v1836_v33  ;;  %v1570_v15 = vadd.f32 %v2459_v41, %v1458_v34  ;;  %v1459_v17 = vadd.f32 %v1889_v12, %v1292_v3  ;;  %v1420_v20 = vpop.f32.mrb[7].mxu1 }
 0x322   : > { %v1150_v0 = vrot.slane %v1136_v54, %v2168_v19  ;;  %1658 = vst.msk [vmem:[%s2546_s29 + $0x4] sm:$0xf] %vm1656_vm9, %v1830_v4  ;;  %1662 = vst.msk [vmem:[%s2546_s29 + $0x14] sm:$0xf] %vm1656_vm9, %v1834_v9  ;;  %v1568_v27 = vadd.f32 %v2455_v38, %v1456_v10  ;;  %v1457_v44 = vadd.f32 %v1420_v20, %v1291_v13 }
 0x323   : > { %v1586_v6 = vmax.f32 %v1570_v15, 0.0  ;;  %v1571_v7 = vadd.f32 %v2457_v39, %v1459_v17  ;;  %v1118_v41 = vrot.slane %v1104_v53, %v2168_v19  ;;  %v1254_v39 = vrot.slane %v1240_v63, %v2168_v19 }
 0x324   : > { %v1584_v54 = vmax.f32 %v1568_v27, 0.0  ;;  %v1569_v38 = vadd.f32 %v2453_v37, %v1457_v44 }
 0x325   : > { %v1839_v21 = vpack.c.bf16 %v1586_v6, %v1586_v6  ;;  %v1587_v24 = vmax.f32 %v1571_v7, 0.0  ;;  %v1158_v25 = vcombine.high %v1118_v41, %v1150_v0  ;;  %v1157_v23 = vcombine.low %v1118_v41, %v1150_v0 }
 0x326   : > { %v1837_v26 = vpack.c.bf16 %v1584_v54, %v1584_v54  ;;  %v1585_v29 = vmax.f32 %v1569_v38, 0.0  ;;  %v1892_v11 = vpop.f32.mrb[8].mxu1  ;;  %v1294_v1 = vcombine.high %v1254_v39, %v1286_v5  ;;  %v1293_v19 = vcombine.low %v1254_v39, %v1286_v5 }
 0x327   : > { %1667 = vst.msk [vmem:[%s2546_s29 + $0x28] sm:$0xf] %vm1656_vm9, %v1839_v21  ;;  %v1840_v28 = vpack.c.bf16 %v1587_v24, %v1587_v24  ;;  %v1462_v46 = vadd.f32 %v1892_v11, %v1158_v25  ;;  %v1433_v53 = vpop.f32.mrb[9].mxu1 }
 0x328   : > { %1665 = vst.msk [vmem:[%s2546_s29 + $0x20] sm:$0xf] %vm1656_vm9, %v1837_v26  ;;  %v1838_v37 = vpack.c.bf16 %v1585_v29, %v1585_v29  ;;  %v1460_v45 = vadd.f32 %v1433_v53, %v1157_v23  ;;  %v1893_v47 = vpop.f32.mrb[10].mxu1 }
 0x329   : > { %1668 = vst.msk [vmem:[%s2546_s29 + $0x2c] sm:$0xf] %vm1656_vm9, %v1840_v28  ;;  %v1574_v48 = vadd.f32 %v1553_v42, %v1462_v46  ;;  %v1463_v49 = vadd.f32 %v1893_v47, %v1294_v1  ;;  %v1436_v14 = vpop.f32.mrb[11].mxu1 }
 0x32a   : > { %1666 = vst.msk [vmem:[%s2546_s29 + $0x24] sm:$0xf] %vm1656_vm9, %v1838_v37  ;;  %v1572_v43 = vadd.f32 %v1543_v22, %v1460_v45  ;;  %v1461_v50 = vadd.f32 %v1436_v14, %v1293_v19 }
 0x32b   : > { %v1590_v51 = vmax.f32 %v1574_v48, 0.0  ;;  %v1575_v8 = vadd.f32 %v1558_v40, %v1463_v49 }
 0x32c   : > { %v1588_v52 = vmax.f32 %v1572_v43, 0.0  ;;  %v1573_v55 = vadd.f32 %v1548_v18, %v1461_v50 }
 0x32d   : > { %v1843_v31 = vpack.c.bf16 %v1590_v51, %v1590_v51  ;;  %v1591_v16 = vmax.f32 %v1575_v8, 0.0 }
 0x32e   : > { %v1841_v56 = vpack.c.bf16 %v1588_v52, %v1588_v52  ;;  %v1589_v57 = vmax.f32 %v1573_v55, 0.0 }
 0x32f   : > { %1671 = vst.msk [vmem:[%s2546_s29 + $0x38] sm:$0xf] %vm1656_vm9, %v1843_v31  ;;  %v1844_v58 = vpack.c.bf16 %v1591_v16, %v1591_v16 }
 0x330   : > { %1669 = vst.msk [vmem:[%s2546_s29 + $0x30] sm:$0xf] %vm1656_vm9, %v1841_v56  ;;  %v1842_v59 = vpack.c.bf16 %v1589_v57, %v1589_v57 }
 0x331   : > { %1672 = vst.msk [vmem:[%s2546_s29 + $0x3c] sm:$0xf] %vm1656_vm9, %v1844_v58 }
 0x332   : > { %1670 = vst.msk [vmem:[%s2546_s29 + $0x34] sm:$0xf] %vm1656_vm9, %v1842_v59 }
 0x333   : > { %2001 = shalt.err (!%p1998_p5)
}
 0x334   : > { %s2002_s11 = scalar_lea.hbm %s2602_s7, 1024  ;;  %s2006_s26 = scalar_lea.hbm %s2666_s4, 2048 }
 0x335   : > { %p2003_p6 = scmp.ne.s32.totalorder %s2602_s7, %s2002_s11  ;;  %p2007_p10 = scmp.lt.u32.totalorder %s2602_s7, %s2666_s4 }
 0x336   : > { %p2008_p11 = scmp.lt.u32.totalorder %s2006_s26, %s2002_s11  ;;  %p2010_p13 = scmp.lt.u32.totalorder %s2002_s11, %s2602_s7 }
 0x337   : > { %p2004_p7 = pnand %p2003_p6, %p2146_p4 }
 0x338   : > { %p2009_p12 = por %p2008_p11, %p2007_p10 }
 0x339   : > { %p2005_p9 = pneg %p2004_p7 }
 0x33a   : > { %p2011_p0 = por %p2010_p13, %p2009_p12 }
 0x33c   : > { %p2012_p1 = pnand %p2011_p0, %p2005_p9 }
 0x33e   : > { %2015 = shalt.err (!%p2012_p1)
}
 0x33f   : > { %s2080_s9 = smov 4  }
 0x340   : > { %1910 = dma.vmem_to_hbm [thread:$0]  (%p2146_p4), %s2606_s30, 1024, %s2602_s7, %s2614_s18, %s2070_s8, %s2070_s8, %s2080_s9  }
 0x341 PF: > { %p1916_p2 = scmp.ge.s32.totalorder %s2066_s20, 2  ;;  %s1703_s5 = sand.u32 1, %s2046_s15  }
 0x342   : > { %s1704_s6 = scalar_lea.sflag [#allocation3], %s1703_s5 }
 0x343   : > { %p1913_p3 = pnand %p1916_p2, %p2153_p8 }
 0x345   : > { %2041 = dma.done.wait (!%p1913_p3), %s1704_s6, 1024  }
 0x346   : > { %2043 = vsyncadd (!%p1913_p3), %s1704_s6, 4294966272  ;;  %s17_s20 = sadd.s32 1, %s2066_s20   ;;  %s2672_s15 = smov %s2050_s16 }
 0x347   : > { %p14_p5 = scmp.ge.s32.totalorder %s17_s20, 4   ;;  %s2673_s16 = smov %s2054_s17 }
 0x348   : > { %s2674_s17 = smov %s2159_s28  ;;  %s2675_s18 = smov %s2062_s19 }
 0x349   : > { %s2676_s19 = smov %s2678_s23  ;;  %16 = sbr.rel (!%p14_p5) target bundleno = 4 (0x4), region = 71 }
 0x350   :  { %1709 = vsyncpa [#allocation3], 1 }
 0x351   :  { %1711 = vsyncpa [#allocation3 + $0x1], 1 }

</bundles_post_ra>
